<compile_context>
chip_gen: v6e
topology: v6e:2x2x1
jax: 0.10.0
libtpu: 0.0.40
codegen_flags: <defaults>
</compile_context>

<pallas_src>
from functools import partial

import numpy as np
import jax
import jax.numpy as jnp
from jax.experimental import pallas as pl
from jax.experimental.pallas import tpu as pltpu


# ----------------------------------------------------------------- kernels ----

def _conv_kernel(pt_ref, pc_ref, wt_ref, wc_ref, bt_ref, bc_ref, ot_ref, oc_ref):
    # Weights-stationary conv matmuls over a folded (batch, group, spatial) N axis:
    #   (2W, K) @ (K, BB*Cg*spatial) + bias   -- bf16 operands, f32 MXU accumulation,
    # one lane-dense (multiple-of-128-lane, unmasked) store per conv, bf16 output.
    vt = jnp.dot(wt_ref[...], pt_ref[...], preferred_element_type=jnp.float32)
    ot_ref[...] = (vt + bt_ref[...]).astype(ot_ref.dtype)
    vc = jnp.dot(wc_ref[...], pc_ref[...], preferred_element_type=jnp.float32)
    oc_ref[...] = (vc + bc_ref[...]).astype(oc_ref.dtype)


def _attn_map_gelu_kernel(cf_ref, ca_ref, tf_ref, ta_ref, sc_ref,
                          w1_ref, w2_ref, bm_ref, o_ref, *, M):
    # Fused cube attention + shortcut*f + 1x1x1 map conv (MXU) + tanh-GELU (EUP).
    # All values are (C, H*W*D) lane-dense; the m (=W) reduction axis is a leading
    # major axis of cf/ca/tf/ta so the loop is pure VPU multiply-add.
    f32 = jnp.float32

    # f[c, n] = sum_m cor[c, m, h, w] * tans[c, m, w, d]     (n = (h, w, d) flattened)
    f = cf_ref[0, 0].astype(f32) * tf_ref[0, 0].astype(f32)
    for m in range(1, M):
        f = f + cf_ref[0, m].astype(f32) * tf_ref[0, m].astype(f32)
    sm = sc_ref[0] * f                                    # shortcut * f   (C, HWD)

    # attn[c, n] = sum_m cor[c, w, h, m] * tans[c, w, m, d]
    a = ca_ref[0, 0].astype(f32) * ta_ref[0, 0].astype(f32)
    for m in range(1, M):
        a = a + ca_ref[0, m].astype(f32) * ta_ref[0, m].astype(f32)

    # 1x1x1 "map" conv over the concatenated 2C channels as two MXU matmuls with a
    # lane-dense output, then tanh-approximate GELU (tolerance-covered, EUP slot).
    y = (jnp.dot(w1_ref[...], sm, preferred_element_type=f32)
         + jnp.dot(w2_ref[...], a, preferred_element_type=f32)
         + bm_ref[...])
    c0 = 0.7978845608028654            # sqrt(2/pi)
    g = 0.5 * y * (1.0 + jnp.tanh(c0 * (y + 0.044715 * y * y * y)))
    o_ref[0] = g.astype(o_ref.dtype)


# ---------------------------------------------------------------- wrapper ----

def cube_attention_forward(x, params, size):
    H, W, D = size
    B, N, C = x.shape
    g = 2
    assert C % g == 0, "groups=2 requires even channel count"
    assert params['wt'].shape[0] == 2 * W and params['wc'].shape[0] == 2 * W, \
        "cube attention requires conv out_channels == 2*W (module invariant)"
    Cg = C // g
    WD, HW, HWD = W * D, H * W, H * W * D
    Kt = g * H * 9
    Kc = g * 9 * D

    # (B, N, C) -> (B, C, H, W, D); shortcut (lane-dense, f32) and grouped-conv input.
    xr = jnp.transpose(x, (0, 2, 1)).reshape(B, C, H, W, D)
    shortcut = xr.reshape(B, C, HWD)
    xg = xr.reshape(B, Cg, g, H, W, D)

    # ---- im2col (wrapper side), folded-batch column layout (K, B*Cg*spatial) ------
    # TODO(synk): at production spatial sizes move the im2col in-kernel (one DMA'd
    # padded block + 9 shifted matmuls) to avoid the ~9x HBM expansion.
    # TransverseConv: Conv3d(2, 2W, (H,3,3), pad (0,1,1)) -> out spatial (1, W, D)
    xpt = jnp.pad(xg, ((0, 0), (0, 0), (0, 0), (0, 0), (1, 1), (1, 1)))
    cols_t = [xpt[:, :, :, :, kw:kw + W, kd:kd + D]
              for kw in range(3) for kd in range(3)]
    pt = jnp.stack(cols_t, axis=4)                          # (B, Cg, g, H, 9, W, D)
    pt = pt.transpose(2, 3, 4, 0, 1, 5, 6).reshape(Kt, B * Cg * WD)

    # CoronalConv: Conv3d(2, 2W, (3,3,D), pad (1,1,0)) -> out spatial (H, W, 1)
    xpc = jnp.pad(xg, ((0, 0), (0, 0), (0, 0), (1, 1), (1, 1), (0, 0)))
    cols_c = [xpc[:, :, :, kh:kh + H, kw:kw + W, :]
              for kh in range(3) for kw in range(3)]
    pc = jnp.stack(cols_c, axis=3)                          # (B, Cg, g, 9, H, W, D)
    pc = pc.transpose(2, 3, 6, 0, 1, 4, 5).reshape(Kc, B * Cg * HW)

    pt = pt.astype(jnp.bfloat16)
    pc = pc.astype(jnp.bfloat16)
    wt_mat = params['wt'].reshape(2 * W, Kt).astype(jnp.bfloat16)
    wc_mat = params['wc'].reshape(2 * W, Kc).astype(jnp.bfloat16)
    bt = params['bt'].reshape(2 * W, 1).astype(jnp.float32)
    bc = params['bc'].reshape(2 * W, 1).astype(jnp.float32)

    # ---- call 1: both convs, batch folded into the matmul N axis -----------------
    # BB batch elements per grid step (whole batch at these sizes): widens N per MXU
    # op and amortizes the ~0.35us per-step overhead.  Falls back to per-batch steps
    # if the patch slabs would not fit comfortably in VMEM.
    patch_bytes_per_b = 2 * (Kt * Cg * WD + Kc * Cg * HW)            # bf16 bytes
    BB = B if patch_bytes_per_b * B <= (8 << 20) else 1
    assert B % BB == 0
    n_steps = B // BB
    TNt, TNc = BB * Cg * WD, BB * Cg * HW

    out_t, out_c = pl.pallas_call(
        _conv_kernel,
        out_shape=(jax.ShapeDtypeStruct((2 * W, B * Cg * WD), jnp.bfloat16),
                   jax.ShapeDtypeStruct((2 * W, B * Cg * HW), jnp.bfloat16)),
        grid=(n_steps,),
        in_specs=[pl.BlockSpec((Kt, TNt), lambda n: (0, n)),
                  pl.BlockSpec((Kc, TNc), lambda n: (0, n)),
                  pl.BlockSpec((2 * W, Kt), lambda n: (0, 0)),
                  pl.BlockSpec((2 * W, Kc), lambda n: (0, 0)),
                  pl.BlockSpec((2 * W, 1), lambda n: (0, 0)),
                  pl.BlockSpec((2 * W, 1), lambda n: (0, 0))],
        out_specs=(pl.BlockSpec((2 * W, TNt), lambda n: (0, n)),
                   pl.BlockSpec((2 * W, TNc), lambda n: (0, n))),
        compiler_params=pltpu.CompilerParams(
            dimension_semantics=("parallel",),
            vmem_limit_bytes=32 * 1024 * 1024),
    )(pt, pc, wt_mat, wc_mat, bt, bc)

    # Untangle (oc2, w1) rows / (b, cg) columns into the PyTorch .view() layouts.
    # (small XLA copies; a production kernel would emit these layouts directly)
    tans5 = (out_t.reshape(2, W, B, Cg, W, D)
             .transpose(2, 3, 0, 1, 4, 5).reshape(B, C, W, W, D))    # [b,c,w1,w2,d]
    cor5 = (out_c.reshape(2, W, B, Cg, H, W)
            .transpose(2, 3, 0, 1, 4, 5).reshape(B, C, W, H, W))     # [b,c,w1,h,w2]

    M = W
    # Elementwise-aligned, lane-dense (B, M, C, H*W*D) bf16 operands for the W-term
    # reduction (cor broadcast along d, tans along h).  Cheap at these sizes; at
    # production sizes keep them compact and broadcast in-kernel instead.
    cf = jnp.broadcast_to(
        jnp.transpose(cor5, (0, 2, 1, 3, 4))[..., None],             # cor[b,c,m,h,w]
        (B, M, C, H, W, D)).reshape(B, M, C, HWD)
    ca = jnp.broadcast_to(
        jnp.transpose(cor5, (0, 4, 1, 3, 2))[..., None],             # cor[b,c,w,h,m]
        (B, M, C, H, W, D)).reshape(B, M, C, HWD)
    tf = jnp.broadcast_to(
        jnp.transpose(tans5, (0, 2, 1, 3, 4))[:, :, :, None, :, :],  # tans[b,c,m,w,d]
        (B, M, C, H, W, D)).reshape(B, M, C, HWD)
    ta = jnp.broadcast_to(
        jnp.transpose(tans5, (0, 3, 1, 2, 4))[:, :, :, None, :, :],  # tans[b,c,w,m,d]
        (B, M, C, H, W, D)).reshape(B, M, C, HWD)

    wmap = params['wmap'].reshape(C, 2 * C).astype(jnp.float32)
    w1 = wmap[:, :C]                        # acts on shortcut * f
    w2 = wmap[:, C:]                        # acts on attn
    bm = params['bmap'].reshape(C, 1).astype(jnp.float32)

    attn_kernel = partial(_attn_map_gelu_kernel, M=M)
    out = pl.pallas_call(
        attn_kernel,
        out_shape=jax.ShapeDtypeStruct((B, C, HWD), jnp.float32),
        grid=(B,),
        in_specs=[pl.BlockSpec((1, M, C, HWD), lambda b: (b, 0, 0, 0)),
                  pl.BlockSpec((1, M, C, HWD), lambda b: (b, 0, 0, 0)),
                  pl.BlockSpec((1, M, C, HWD), lambda b: (b, 0, 0, 0)),
                  pl.BlockSpec((1, M, C, HWD), lambda b: (b, 0, 0, 0)),
                  pl.BlockSpec((1, C, HWD), lambda b: (b, 0, 0)),
                  pl.BlockSpec((C, C), lambda b: (0, 0)),
                  pl.BlockSpec((C, C), lambda b: (0, 0)),
                  pl.BlockSpec((C, 1), lambda b: (0, 0))],
        out_specs=pl.BlockSpec((1, C, HWD), lambda b: (b, 0, 0)),
        compiler_params=pltpu.CompilerParams(
            dimension_semantics=("parallel",),
            vmem_limit_bytes=32 * 1024 * 1024),
    )(cf, ca, tf, ta, shortcut, w1, w2, bm)

    # (B, C, N) -> (B, N, C)
    return out.transpose(0, 2, 1)


# ----------------------------------------------------- pure-JAX reference ----

def reference_forward(x, params, size):
    H, W, D = size
    B, N, C = x.shape
    g = 2
    xr = jnp.transpose(x, (0, 2, 1)).reshape(B, C, H, W, D)
    shortcut = xr
    xg = xr.reshape(B * C // g, g, H, W, D)
    dn = ('NCDHW', 'OIDHW', 'NCDHW')
    tans = jax.lax.conv_general_dilated(
        xg, params['wt'], (1, 1, 1), [(0, 0), (1, 1), (1, 1)],
        dimension_numbers=dn) + params['bt'][None, :, None, None, None]
    tans = tans.reshape(B, C, W, W, D)
    cor = jax.lax.conv_general_dilated(
        xg, params['wc'], (1, 1, 1), [(1, 1), (1, 1), (0, 0)],
        dimension_numbers=dn) + params['bc'][None, :, None, None, None]
    cor = cor.reshape(B, C, W, H, W)
    t1 = jnp.transpose(tans, (0, 1, 3, 2, 4))
    c1 = jnp.transpose(cor, (0, 1, 4, 3, 2))
    f = jnp.transpose(jnp.matmul(c1, t1), (0, 1, 3, 2, 4))
    attn = jnp.transpose(jnp.matmul(cor, tans), (0, 1, 3, 2, 4))
    cat = jnp.concatenate([shortcut * f, attn], axis=1)
    wm = params['wmap'].reshape(C, 2 * C)
    y = jnp.einsum('oc,bchwd->bohwd', wm, cat) + params['bmap'][None, :, None, None, None]
    y = 0.5 * y * (1.0 + jax.lax.erf(y / np.sqrt(2.0)))
    return y.reshape(B, C, N).transpose(0, 2, 1)


# --------------------------------------------------------------------- main ----

if __name__ == "__main__":
    B, C = 2, 4                         # in_channel = 4 (must be even: groups=2)
    size = (8, 8, 8)                    # (H, W, D)
    H, W, D = size
    N = H * W * D

    key = jax.random.PRNGKey(0)
    ks = jax.random.split(key, 7)
    params = {
        'wt': 0.05 * jax.random.normal(ks[0], (2 * W, 2, H, 3, 3), jnp.float32),
        'bt': 0.05 * jax.random.normal(ks[1], (2 * W,), jnp.float32),
        'wc': 0.05 * jax.random.normal(ks[2], (2 * W, 2, 3, 3, D), jnp.float32),
        'bc': 0.05 * jax.random.normal(ks[3], (2 * W,), jnp.float32),
        'wmap': 0.05 * jax.random.normal(ks[4], (C, 2 * C, 1, 1, 1), jnp.float32),
        'bmap': 0.05 * jax.random.normal(ks[5], (C,), jnp.float32),
    }
    x = jax.random.normal(ks[6], (B, N, C), jnp.float32)

    fwd = jax.jit(lambda xx: cube_attention_forward(xx, params, size))
    out = jax.block_until_ready(fwd(x))
    assert out.shape == (B, N, C)

    ref = reference_forward(x, params, size)
    np.testing.assert_allclose(np.asarray(out), np.asarray(ref), rtol=2e-2, atol=2e-2)

    print("KERNEL_OK")
</pallas_src>

<mosaic_0001>
module attributes {stable_mosaic.version = 11 : i64} {
  func.func @_conv_kernel(%arg0: i32, %arg1: memref<144x256xbf16, #tpu.memory_space<vmem>>, %arg2: memref<144x256xbf16, #tpu.memory_space<vmem>>, %arg3: memref<16x144xbf16, #tpu.memory_space<vmem>>, %arg4: memref<16x144xbf16, #tpu.memory_space<vmem>>, %arg5: memref<16x1xf32, #tpu.memory_space<vmem>>, %arg6: memref<16x1xf32, #tpu.memory_space<vmem>>, %arg7: memref<16x256xbf16, #tpu.memory_space<vmem>>, %arg8: memref<16x256xbf16, #tpu.memory_space<vmem>>) attributes {dimension_semantics = [#tpu.dimension_semantics<parallel>], iteration_bounds = array<i64: 1>, scalar_prefetch = 0 : i64, scratch_operands = 0 : i64, tpu.core_type = #tpu.core_type<tc>, window_params = [{transform_indices = @transform_0, window_bounds = array<i64: 144, 256>}, {transform_indices = @transform_1, window_bounds = array<i64: 144, 256>}, {pipeline_mode = #tpu.pipeline_mode<synchronous>, transform_indices = @transform_2, window_bounds = array<i64: 16, 144>}, {pipeline_mode = #tpu.pipeline_mode<synchronous>, transform_indices = @transform_3, window_bounds = array<i64: 16, 144>}, {pipeline_mode = #tpu.pipeline_mode<synchronous>, transform_indices = @transform_4, window_bounds = array<i64: 16, 1>}, {pipeline_mode = #tpu.pipeline_mode<synchronous>, transform_indices = @transform_5, window_bounds = array<i64: 16, 1>}, {transform_indices = @transform_6, window_bounds = array<i64: 16, 256>}, {transform_indices = @transform_7, window_bounds = array<i64: 16, 256>}]} {
    %c0 = arith.constant 0 : index
    %c0_0 = arith.constant 0 : index
    %0 = vector.load %arg3[%c0, %c0_0] : memref<16x144xbf16, #tpu.memory_space<vmem>>, vector<16x144xbf16>
    %c0_1 = arith.constant 0 : index
    %c0_2 = arith.constant 0 : index
    %1 = vector.load %arg1[%c0_1, %c0_2] : memref<144x256xbf16, #tpu.memory_space<vmem>>, vector<144x256xbf16>
    %cst = arith.constant dense<0.000000e+00> : vector<16x256xf32>
    %2 = tpu.matmul %0, %1, %cst {dimension_numbers = #tpu.dot_dimension_numbers<[1], [0], [0], [1], [0, 0, 1, 1], [], []>} : vector<16x144xbf16>, vector<144x256xbf16>, vector<16x256xf32> -> vector<16x256xf32>
    %c0_3 = arith.constant 0 : index
    %c0_4 = arith.constant 0 : index
    %3 = vector.load %arg5[%c0_3, %c0_4] : memref<16x1xf32, #tpu.memory_space<vmem>>, vector<16x1xf32>
    %4 = vector.broadcast %3 : vector<16x1xf32> to vector<16x256xf32>
    %5 = arith.addf %2, %4 : vector<16x256xf32>
    %6 = arith.truncf %5 : vector<16x256xf32> to vector<16x256xbf16>
    %c0_5 = arith.constant 0 : index
    %c0_6 = arith.constant 0 : index
    %7 = vector.load %arg7[%c0_5, %c0_6] : memref<16x256xbf16, #tpu.memory_space<vmem>>, vector<16x256xbf16>
    tpu.vector_store %arg7[%c0_5, %c0_6], %6 {strides = array<i32>} : memref<16x256xbf16, #tpu.memory_space<vmem>>, vector<16x256xbf16>,
    %c0_7 = arith.constant 0 : index
    %c0_8 = arith.constant 0 : index
    %8 = vector.load %arg4[%c0_7, %c0_8] : memref<16x144xbf16, #tpu.memory_space<vmem>>, vector<16x144xbf16>
    %c0_9 = arith.constant 0 : index
    %c0_10 = arith.constant 0 : index
    %9 = vector.load %arg2[%c0_9, %c0_10] : memref<144x256xbf16, #tpu.memory_space<vmem>>, vector<144x256xbf16>
    %cst_11 = arith.constant dense<0.000000e+00> : vector<16x256xf32>
    %10 = tpu.matmul %8, %9, %cst_11 {dimension_numbers = #tpu.dot_dimension_numbers<[1], [0], [0], [1], [0, 0, 1, 1], [], []>} : vector<16x144xbf16>, vector<144x256xbf16>, vector<16x256xf32> -> vector<16x256xf32>
    %c0_12 = arith.constant 0 : index
    %c0_13 = arith.constant 0 : index
    %11 = vector.load %arg6[%c0_12, %c0_13] : memref<16x1xf32, #tpu.memory_space<vmem>>, vector<16x1xf32>
    %12 = vector.broadcast %11 : vector<16x1xf32> to vector<16x256xf32>
    %13 = arith.addf %10, %12 : vector<16x256xf32>
    %14 = arith.truncf %13 : vector<16x256xf32> to vector<16x256xbf16>
    %c0_14 = arith.constant 0 : index
    %c0_15 = arith.constant 0 : index
    %15 = vector.load %arg8[%c0_14, %c0_15] : memref<16x256xbf16, #tpu.memory_space<vmem>>, vector<16x256xbf16>
    tpu.vector_store %arg8[%c0_14, %c0_15], %14 {strides = array<i32>} : memref<16x256xbf16, #tpu.memory_space<vmem>>, vector<16x256xbf16>,
    return
  }
  func.func @transform_0(%arg0: i32) -> (i32, i32) {
    %c0_i32 = arith.constant 0 : i32
    %c0_i32_0 = arith.constant 0 : i32
    return %c0_i32, %arg0 : i32, i32
  }
  func.func @transform_1(%arg0: i32) -> (i32, i32) {
    %c0_i32 = arith.constant 0 : i32
    %c0_i32_0 = arith.constant 0 : i32
    return %c0_i32, %arg0 : i32, i32
  }
  func.func @transform_2(%arg0: i32) -> (i32, i32) {
    %c0_i32 = arith.constant 0 : i32
    %c0_i32_0 = arith.constant 0 : i32
    %c0_i32_1 = arith.constant 0 : i32
    return %c0_i32, %c0_i32_0 : i32, i32
  }
  func.func @transform_3(%arg0: i32) -> (i32, i32) {
    %c0_i32 = arith.constant 0 : i32
    %c0_i32_0 = arith.constant 0 : i32
    %c0_i32_1 = arith.constant 0 : i32
    return %c0_i32, %c0_i32_0 : i32, i32
  }
  func.func @transform_4(%arg0: i32) -> (i32, i32) {
    %c0_i32 = arith.constant 0 : i32
    %c0_i32_0 = arith.constant 0 : i32
    %c0_i32_1 = arith.constant 0 : i32
    return %c0_i32, %c0_i32_0 : i32, i32
  }
  func.func @transform_5(%arg0: i32) -> (i32, i32) {
    %c0_i32 = arith.constant 0 : i32
    %c0_i32_0 = arith.constant 0 : i32
    %c0_i32_1 = arith.constant 0 : i32
    return %c0_i32, %c0_i32_0 : i32, i32
  }
  func.func @transform_6(%arg0: i32) -> (i32, i32) {
    %c0_i32 = arith.constant 0 : i32
    %c0_i32_0 = arith.constant 0 : i32
    return %c0_i32, %arg0 : i32, i32
  }
  func.func @transform_7(%arg0: i32) -> (i32, i32) {
    %c0_i32 = arith.constant 0 : i32
    %c0_i32_0 = arith.constant 0 : i32
    return %c0_i32, %arg0 : i32, i32
  }
}

module attributes {stable_mosaic.version = 11 : i64} {
  func.func @_attn_map_gelu_kernel(%arg0: i32, %arg1: memref<1x8x4x512xbf16, #tpu.memory_space<vmem>>, %arg2: memref<1x8x4x512xbf16, #tpu.memory_space<vmem>>, %arg3: memref<1x8x4x512xbf16, #tpu.memory_space<vmem>>, %arg4: memref<1x8x4x512xbf16, #tpu.memory_space<vmem>>, %arg5: memref<1x4x512xf32, #tpu.memory_space<vmem>>, %arg6: memref<4x4xf32, #tpu.memory_space<vmem>>, %arg7: memref<4x4xf32, #tpu.memory_space<vmem>>, %arg8: memref<4x1xf32, #tpu.memory_space<vmem>>, %arg9: memref<1x4x512xf32, #tpu.memory_space<vmem>>) attributes {dimension_semantics = [#tpu.dimension_semantics<parallel>], iteration_bounds = array<i64: 2>, scalar_prefetch = 0 : i64, scratch_operands = 0 : i64, tpu.core_type = #tpu.core_type<tc>, window_params = [{transform_indices = @transform_0, window_bounds = array<i64: 1, 8, 4, 512>}, {transform_indices = @transform_1, window_bounds = array<i64: 1, 8, 4, 512>}, {transform_indices = @transform_2, window_bounds = array<i64: 1, 8, 4, 512>}, {transform_indices = @transform_3, window_bounds = array<i64: 1, 8, 4, 512>}, {transform_indices = @transform_4, window_bounds = array<i64: 1, 4, 512>}, {pipeline_mode = #tpu.pipeline_mode<synchronous>, transform_indices = @transform_5, window_bounds = array<i64: 4, 4>}, {pipeline_mode = #tpu.pipeline_mode<synchronous>, transform_indices = @transform_6, window_bounds = array<i64: 4, 4>}, {pipeline_mode = #tpu.pipeline_mode<synchronous>, transform_indices = @transform_7, window_bounds = array<i64: 4, 1>}, {transform_indices = @transform_8, window_bounds = array<i64: 1, 4, 512>}]} {
    %c0 = arith.constant 0 : index
    %c0_0 = arith.constant 0 : index
    %c0_1 = arith.constant 0 : index
    %c0_2 = arith.constant 0 : index
    %0 = vector.load %arg1[%c0, %c0_0, %c0_1, %c0_2] : memref<1x8x4x512xbf16, #tpu.memory_space<vmem>>, vector<1x1x4x512xbf16>
    %1 = vector.shape_cast %0 : vector<1x1x4x512xbf16> to vector<4x512xbf16>
    %2 = arith.extf %1 : vector<4x512xbf16> to vector<4x512xf32>
    %c0_3 = arith.constant 0 : index
    %c0_4 = arith.constant 0 : index
    %c0_5 = arith.constant 0 : index
    %c0_6 = arith.constant 0 : index
    %3 = vector.load %arg3[%c0_3, %c0_4, %c0_5, %c0_6] : memref<1x8x4x512xbf16, #tpu.memory_space<vmem>>, vector<1x1x4x512xbf16>
    %4 = vector.shape_cast %3 : vector<1x1x4x512xbf16> to vector<4x512xbf16>
    %5 = arith.extf %4 : vector<4x512xbf16> to vector<4x512xf32>
    %6 = arith.mulf %2, %5 : vector<4x512xf32>
    %c0_7 = arith.constant 0 : index
    %c1 = arith.constant 1 : index
    %c0_8 = arith.constant 0 : index
    %c0_9 = arith.constant 0 : index
    %7 = vector.load %arg1[%c0_7, %c1, %c0_8, %c0_9] : memref<1x8x4x512xbf16, #tpu.memory_space<vmem>>, vector<1x1x4x512xbf16>
    %8 = vector.shape_cast %7 : vector<1x1x4x512xbf16> to vector<4x512xbf16>
    %9 = arith.extf %8 : vector<4x512xbf16> to vector<4x512xf32>
    %c0_10 = arith.constant 0 : index
    %c1_11 = arith.constant 1 : index
    %c0_12 = arith.constant 0 : index
    %c0_13 = arith.constant 0 : index
    %10 = vector.load %arg3[%c0_10, %c1_11, %c0_12, %c0_13] : memref<1x8x4x512xbf16, #tpu.memory_space<vmem>>, vector<1x1x4x512xbf16>
    %11 = vector.shape_cast %10 : vector<1x1x4x512xbf16> to vector<4x512xbf16>
    %12 = arith.extf %11 : vector<4x512xbf16> to vector<4x512xf32>
    %13 = arith.mulf %9, %12 : vector<4x512xf32>
    %14 = arith.addf %6, %13 : vector<4x512xf32>
    %c0_14 = arith.constant 0 : index
    %c2 = arith.constant 2 : index
    %c0_15 = arith.constant 0 : index
    %c0_16 = arith.constant 0 : index
    %15 = vector.load %arg1[%c0_14, %c2, %c0_15, %c0_16] : memref<1x8x4x512xbf16, #tpu.memory_space<vmem>>, vector<1x1x4x512xbf16>
    %16 = vector.shape_cast %15 : vector<1x1x4x512xbf16> to vector<4x512xbf16>
    %17 = arith.extf %16 : vector<4x512xbf16> to vector<4x512xf32>
    %c0_17 = arith.constant 0 : index
    %c2_18 = arith.constant 2 : index
    %c0_19 = arith.constant 0 : index
    %c0_20 = arith.constant 0 : index
    %18 = vector.load %arg3[%c0_17, %c2_18, %c0_19, %c0_20] : memref<1x8x4x512xbf16, #tpu.memory_space<vmem>>, vector<1x1x4x512xbf16>
    %19 = vector.shape_cast %18 : vector<1x1x4x512xbf16> to vector<4x512xbf16>
    %20 = arith.extf %19 : vector<4x512xbf16> to vector<4x512xf32>
    %21 = arith.mulf %17, %20 : vector<4x512xf32>
    %22 = arith.addf %14, %21 : vector<4x512xf32>
    %c0_21 = arith.constant 0 : index
    %c3 = arith.constant 3 : index
    %c0_22 = arith.constant 0 : index
    %c0_23 = arith.constant 0 : index
    %23 = vector.load %arg1[%c0_21, %c3, %c0_22, %c0_23] : memref<1x8x4x512xbf16, #tpu.memory_space<vmem>>, vector<1x1x4x512xbf16>
    %24 = vector.shape_cast %23 : vector<1x1x4x512xbf16> to vector<4x512xbf16>
    %25 = arith.extf %24 : vector<4x512xbf16> to vector<4x512xf32>
    %c0_24 = arith.constant 0 : index
    %c3_25 = arith.constant 3 : index
    %c0_26 = arith.constant 0 : index
    %c0_27 = arith.constant 0 : index
    %26 = vector.load %arg3[%c0_24, %c3_25, %c0_26, %c0_27] : memref<1x8x4x512xbf16, #tpu.memory_space<vmem>>, vector<1x1x4x512xbf16>
    %27 = vector.shape_cast %26 : vector<1x1x4x512xbf16> to vector<4x512xbf16>
    %28 = arith.extf %27 : vector<4x512xbf16> to vector<4x512xf32>
    %29 = arith.mulf %25, %28 : vector<4x512xf32>
    %30 = arith.addf %22, %29 : vector<4x512xf32>
    %c0_28 = arith.constant 0 : index
    %c4 = arith.constant 4 : index
    %c0_29 = arith.constant 0 : index
    %c0_30 = arith.constant 0 : index
    %31 = vector.load %arg1[%c0_28, %c4, %c0_29, %c0_30] : memref<1x8x4x512xbf16, #tpu.memory_space<vmem>>, vector<1x1x4x512xbf16>
    %32 = vector.shape_cast %31 : vector<1x1x4x512xbf16> to vector<4x512xbf16>
    %33 = arith.extf %32 : vector<4x512xbf16> to vector<4x512xf32>
    %c0_31 = arith.constant 0 : index
    %c4_32 = arith.constant 4 : index
    %c0_33 = arith.constant 0 : index
    %c0_34 = arith.constant 0 : index
    %34 = vector.load %arg3[%c0_31, %c4_32, %c0_33, %c0_34] : memref<1x8x4x512xbf16, #tpu.memory_space<vmem>>, vector<1x1x4x512xbf16>
    %35 = vector.shape_cast %34 : vector<1x1x4x512xbf16> to vector<4x512xbf16>
    %36 = arith.extf %35 : vector<4x512xbf16> to vector<4x512xf32>
    %37 = arith.mulf %33, %36 : vector<4x512xf32>
    %38 = arith.addf %30, %37 : vector<4x512xf32>
    %c0_35 = arith.constant 0 : index
    %c5 = arith.constant 5 : index
    %c0_36 = arith.constant 0 : index
    %c0_37 = arith.constant 0 : index
    %39 = vector.load %arg1[%c0_35, %c5, %c0_36, %c0_37] : memref<1x8x4x512xbf16, #tpu.memory_space<vmem>>, vector<1x1x4x512xbf16>
    %40 = vector.shape_cast %39 : vector<1x1x4x512xbf16> to vector<4x512xbf16>
    %41 = arith.extf %40 : vector<4x512xbf16> to vector<4x512xf32>
    %c0_38 = arith.constant 0 : index
    %c5_39 = arith.constant 5 : index
    %c0_40 = arith.constant 0 : index
    %c0_41 = arith.constant 0 : index
    %42 = vector.load %arg3[%c0_38, %c5_39, %c0_40, %c0_41] : memref<1x8x4x512xbf16, #tpu.memory_space<vmem>>, vector<1x1x4x512xbf16>
    %43 = vector.shape_cast %42 : vector<1x1x4x512xbf16> to vector<4x512xbf16>
    %44 = arith.extf %43 : vector<4x512xbf16> to vector<4x512xf32>
    %45 = arith.mulf %41, %44 : vector<4x512xf32>
    %46 = arith.addf %38, %45 : vector<4x512xf32>
    %c0_42 = arith.constant 0 : index
    %c6 = arith.constant 6 : index
    %c0_43 = arith.constant 0 : index
    %c0_44 = arith.constant 0 : index
    %47 = vector.load %arg1[%c0_42, %c6, %c0_43, %c0_44] : memref<1x8x4x512xbf16, #tpu.memory_space<vmem>>, vector<1x1x4x512xbf16>
    %48 = vector.shape_cast %47 : vector<1x1x4x512xbf16> to vector<4x512xbf16>
    %49 = arith.extf %48 : vector<4x512xbf16> to vector<4x512xf32>
    %c0_45 = arith.constant 0 : index
    %c6_46 = arith.constant 6 : index
    %c0_47 = arith.constant 0 : index
    %c0_48 = arith.constant 0 : index
    %50 = vector.load %arg3[%c0_45, %c6_46, %c0_47, %c0_48] : memref<1x8x4x512xbf16, #tpu.memory_space<vmem>>, vector<1x1x4x512xbf16>
    %51 = vector.shape_cast %50 : vector<1x1x4x512xbf16> to vector<4x512xbf16>
    %52 = arith.extf %51 : vector<4x512xbf16> to vector<4x512xf32>
    %53 = arith.mulf %49, %52 : vector<4x512xf32>
    %54 = arith.addf %46, %53 : vector<4x512xf32>
    %c0_49 = arith.constant 0 : index
    %c7 = arith.constant 7 : index
    %c0_50 = arith.constant 0 : index
    %c0_51 = arith.constant 0 : index
    %55 = vector.load %arg1[%c0_49, %c7, %c0_50, %c0_51] : memref<1x8x4x512xbf16, #tpu.memory_space<vmem>>, vector<1x1x4x512xbf16>
    %56 = vector.shape_cast %55 : vector<1x1x4x512xbf16> to vector<4x512xbf16>
    %57 = arith.extf %56 : vector<4x512xbf16> to vector<4x512xf32>
    %c0_52 = arith.constant 0 : index
    %c7_53 = arith.constant 7 : index
    %c0_54 = arith.constant 0 : index
    %c0_55 = arith.constant 0 : index
    %58 = vector.load %arg3[%c0_52, %c7_53, %c0_54, %c0_55] : memref<1x8x4x512xbf16, #tpu.memory_space<vmem>>, vector<1x1x4x512xbf16>
    %59 = vector.shape_cast %58 : vector<1x1x4x512xbf16> to vector<4x512xbf16>
    %60 = arith.extf %59 : vector<4x512xbf16> to vector<4x512xf32>
    %61 = arith.mulf %57, %60 : vector<4x512xf32>
    %62 = arith.addf %54, %61 : vector<4x512xf32>
    %c0_56 = arith.constant 0 : index
    %c0_57 = arith.constant 0 : index
    %c0_58 = arith.constant 0 : index
    %63 = vector.load %arg5[%c0_56, %c0_57, %c0_58] : memref<1x4x512xf32, #tpu.memory_space<vmem>>, vector<1x4x512xf32>
    %64 = vector.shape_cast %63 : vector<1x4x512xf32> to vector<4x512xf32>
    %65 = arith.mulf %64, %62 : vector<4x512xf32>
    %c0_59 = arith.constant 0 : index
    %c0_60 = arith.constant 0 : index
    %c0_61 = arith.constant 0 : index
    %c0_62 = arith.constant 0 : index
    %66 = vector.load %arg2[%c0_59, %c0_60, %c0_61, %c0_62] : memref<1x8x4x512xbf16, #tpu.memory_space<vmem>>, vector<1x1x4x512xbf16>
    %67 = vector.shape_cast %66 : vector<1x1x4x512xbf16> to vector<4x512xbf16>
    %68 = arith.extf %67 : vector<4x512xbf16> to vector<4x512xf32>
    %c0_63 = arith.constant 0 : index
    %c0_64 = arith.constant 0 : index
    %c0_65 = arith.constant 0 : index
    %c0_66 = arith.constant 0 : index
    %69 = vector.load %arg4[%c0_63, %c0_64, %c0_65, %c0_66] : memref<1x8x4x512xbf16, #tpu.memory_space<vmem>>, vector<1x1x4x512xbf16>
    %70 = vector.shape_cast %69 : vector<1x1x4x512xbf16> to vector<4x512xbf16>
    %71 = arith.extf %70 : vector<4x512xbf16> to vector<4x512xf32>
    %72 = arith.mulf %68, %71 : vector<4x512xf32>
    %c0_67 = arith.constant 0 : index
    %c1_68 = arith.constant 1 : index
    %c0_69 = arith.constant 0 : index
    %c0_70 = arith.constant 0 : index
    %73 = vector.load %arg2[%c0_67, %c1_68, %c0_69, %c0_70] : memref<1x8x4x512xbf16, #tpu.memory_space<vmem>>, vector<1x1x4x512xbf16>
    %74 = vector.shape_cast %73 : vector<1x1x4x512xbf16> to vector<4x512xbf16>
    %75 = arith.extf %74 : vector<4x512xbf16> to vector<4x512xf32>
    %c0_71 = arith.constant 0 : index
    %c1_72 = arith.constant 1 : index
    %c0_73 = arith.constant 0 : index
    %c0_74 = arith.constant 0 : index
    %76 = vector.load %arg4[%c0_71, %c1_72, %c0_73, %c0_74] : memref<1x8x4x512xbf16, #tpu.memory_space<vmem>>, vector<1x1x4x512xbf16>
    %77 = vector.shape_cast %76 : vector<1x1x4x512xbf16> to vector<4x512xbf16>
    %78 = arith.extf %77 : vector<4x512xbf16> to vector<4x512xf32>
    %79 = arith.mulf %75, %78 : vector<4x512xf32>
    %80 = arith.addf %72, %79 : vector<4x512xf32>
    %c0_75 = arith.constant 0 : index
    %c2_76 = arith.constant 2 : index
    %c0_77 = arith.constant 0 : index
    %c0_78 = arith.constant 0 : index
    %81 = vector.load %arg2[%c0_75, %c2_76, %c0_77, %c0_78] : memref<1x8x4x512xbf16, #tpu.memory_space<vmem>>, vector<1x1x4x512xbf16>
    %82 = vector.shape_cast %81 : vector<1x1x4x512xbf16> to vector<4x512xbf16>
    %83 = arith.extf %82 : vector<4x512xbf16> to vector<4x512xf32>
    %c0_79 = arith.constant 0 : index
    %c2_80 = arith.constant 2 : index
    %c0_81 = arith.constant 0 : index
    %c0_82 = arith.constant 0 : index
    %84 = vector.load %arg4[%c0_79, %c2_80, %c0_81, %c0_82] : memref<1x8x4x512xbf16, #tpu.memory_space<vmem>>, vector<1x1x4x512xbf16>
    %85 = vector.shape_cast %84 : vector<1x1x4x512xbf16> to vector<4x512xbf16>
    %86 = arith.extf %85 : vector<4x512xbf16> to vector<4x512xf32>
    %87 = arith.mulf %83, %86 : vector<4x512xf32>
    %88 = arith.addf %80, %87 : vector<4x512xf32>
    %c0_83 = arith.constant 0 : index
    %c3_84 = arith.constant 3 : index
    %c0_85 = arith.constant 0 : index
    %c0_86 = arith.constant 0 : index
    %89 = vector.load %arg2[%c0_83, %c3_84, %c0_85, %c0_86] : memref<1x8x4x512xbf16, #tpu.memory_space<vmem>>, vector<1x1x4x512xbf16>
    %90 = vector.shape_cast %89 : vector<1x1x4x512xbf16> to vector<4x512xbf16>
    %91 = arith.extf %90 : vector<4x512xbf16> to vector<4x512xf32>
    %c0_87 = arith.constant 0 : index
    %c3_88 = arith.constant 3 : index
    %c0_89 = arith.constant 0 : index
    %c0_90 = arith.constant 0 : index
    %92 = vector.load %arg4[%c0_87, %c3_88, %c0_89, %c0_90] : memref<1x8x4x512xbf16, #tpu.memory_space<vmem>>, vector<1x1x4x512xbf16>
    %93 = vector.shape_cast %92 : vector<1x1x4x512xbf16> to vector<4x512xbf16>
    %94 = arith.extf %93 : vector<4x512xbf16> to vector<4x512xf32>
    %95 = arith.mulf %91, %94 : vector<4x512xf32>
    %96 = arith.addf %88, %95 : vector<4x512xf32>
    %c0_91 = arith.constant 0 : index
    %c4_92 = arith.constant 4 : index
    %c0_93 = arith.constant 0 : index
    %c0_94 = arith.constant 0 : index
    %97 = vector.load %arg2[%c0_91, %c4_92, %c0_93, %c0_94] : memref<1x8x4x512xbf16, #tpu.memory_space<vmem>>, vector<1x1x4x512xbf16>
    %98 = vector.shape_cast %97 : vector<1x1x4x512xbf16> to vector<4x512xbf16>
    %99 = arith.extf %98 : vector<4x512xbf16> to vector<4x512xf32>
    %c0_95 = arith.constant 0 : index
    %c4_96 = arith.constant 4 : index
    %c0_97 = arith.constant 0 : index
    %c0_98 = arith.constant 0 : index
    %100 = vector.load %arg4[%c0_95, %c4_96, %c0_97, %c0_98] : memref<1x8x4x512xbf16, #tpu.memory_space<vmem>>, vector<1x1x4x512xbf16>
    %101 = vector.shape_cast %100 : vector<1x1x4x512xbf16> to vector<4x512xbf16>
    %102 = arith.extf %101 : vector<4x512xbf16> to vector<4x512xf32>
    %103 = arith.mulf %99, %102 : vector<4x512xf32>
    %104 = arith.addf %96, %103 : vector<4x512xf32>
    %c0_99 = arith.constant 0 : index
    %c5_100 = arith.constant 5 : index
    %c0_101 = arith.constant 0 : index
    %c0_102 = arith.constant 0 : index
    %105 = vector.load %arg2[%c0_99, %c5_100, %c0_101, %c0_102] : memref<1x8x4x512xbf16, #tpu.memory_space<vmem>>, vector<1x1x4x512xbf16>
    %106 = vector.shape_cast %105 : vector<1x1x4x512xbf16> to vector<4x512xbf16>
    %107 = arith.extf %106 : vector<4x512xbf16> to vector<4x512xf32>
    %c0_103 = arith.constant 0 : index
    %c5_104 = arith.constant 5 : index
    %c0_105 = arith.constant 0 : index
    %c0_106 = arith.constant 0 : index
    %108 = vector.load %arg4[%c0_103, %c5_104, %c0_105, %c0_106] : memref<1x8x4x512xbf16, #tpu.memory_space<vmem>>, vector<1x1x4x512xbf16>
    %109 = vector.shape_cast %108 : vector<1x1x4x512xbf16> to vector<4x512xbf16>
    %110 = arith.extf %109 : vector<4x512xbf16> to vector<4x512xf32>
    %111 = arith.mulf %107, %110 : vector<4x512xf32>
    %112 = arith.addf %104, %111 : vector<4x512xf32>
    %c0_107 = arith.constant 0 : index
    %c6_108 = arith.constant 6 : index
    %c0_109 = arith.constant 0 : index
    %c0_110 = arith.constant 0 : index
    %113 = vector.load %arg2[%c0_107, %c6_108, %c0_109, %c0_110] : memref<1x8x4x512xbf16, #tpu.memory_space<vmem>>, vector<1x1x4x512xbf16>
    %114 = vector.shape_cast %113 : vector<1x1x4x512xbf16> to vector<4x512xbf16>
    %115 = arith.extf %114 : vector<4x512xbf16> to vector<4x512xf32>
    %c0_111 = arith.constant 0 : index
    %c6_112 = arith.constant 6 : index
    %c0_113 = arith.constant 0 : index
    %c0_114 = arith.constant 0 : index
    %116 = vector.load %arg4[%c0_111, %c6_112, %c0_113, %c0_114] : memref<1x8x4x512xbf16, #tpu.memory_space<vmem>>, vector<1x1x4x512xbf16>
    %117 = vector.shape_cast %116 : vector<1x1x4x512xbf16> to vector<4x512xbf16>
    %118 = arith.extf %117 : vector<4x512xbf16> to vector<4x512xf32>
    %119 = arith.mulf %115, %118 : vector<4x512xf32>
    %120 = arith.addf %112, %119 : vector<4x512xf32>
    %c0_115 = arith.constant 0 : index
    %c7_116 = arith.constant 7 : index
    %c0_117 = arith.constant 0 : index
    %c0_118 = arith.constant 0 : index
    %121 = vector.load %arg2[%c0_115, %c7_116, %c0_117, %c0_118] : memref<1x8x4x512xbf16, #tpu.memory_space<vmem>>, vector<1x1x4x512xbf16>
    %122 = vector.shape_cast %121 : vector<1x1x4x512xbf16> to vector<4x512xbf16>
    %123 = arith.extf %122 : vector<4x512xbf16> to vector<4x512xf32>
    %c0_119 = arith.constant 0 : index
    %c7_120 = arith.constant 7 : index
    %c0_121 = arith.constant 0 : index
    %c0_122 = arith.constant 0 : index
    %124 = vector.load %arg4[%c0_119, %c7_120, %c0_121, %c0_122] : memref<1x8x4x512xbf16, #tpu.memory_space<vmem>>, vector<1x1x4x512xbf16>
    %125 = vector.shape_cast %124 : vector<1x1x4x512xbf16> to vector<4x512xbf16>
    %126 = arith.extf %125 : vector<4x512xbf16> to vector<4x512xf32>
    %127 = arith.mulf %123, %126 : vector<4x512xf32>
    %128 = arith.addf %120, %127 : vector<4x512xf32>
    %c0_123 = arith.constant 0 : index
    %c0_124 = arith.constant 0 : index
    %129 = vector.load %arg6[%c0_123, %c0_124] : memref<4x4xf32, #tpu.memory_space<vmem>>, vector<4x4xf32>
    %cst = arith.constant dense<0.000000e+00> : vector<4x512xf32>
    %130 = tpu.matmul %129, %65, %cst {dimension_numbers = #tpu.dot_dimension_numbers<[1], [0], [0], [1], [0, 0, 1, 1], [], []>} : vector<4x4xf32>, vector<4x512xf32>, vector<4x512xf32> -> vector<4x512xf32>
    %c0_125 = arith.constant 0 : index
    %c0_126 = arith.constant 0 : index
    %131 = vector.load %arg7[%c0_125, %c0_126] : memref<4x4xf32, #tpu.memory_space<vmem>>, vector<4x4xf32>
    %cst_127 = arith.constant dense<0.000000e+00> : vector<4x512xf32>
    %132 = tpu.matmul %131, %128, %cst_127 {dimension_numbers = #tpu.dot_dimension_numbers<[1], [0], [0], [1], [0, 0, 1, 1], [], []>} : vector<4x4xf32>, vector<4x512xf32>, vector<4x512xf32> -> vector<4x512xf32>
    %133 = arith.addf %130, %132 : vector<4x512xf32>
    %c0_128 = arith.constant 0 : index
    %c0_129 = arith.constant 0 : index
    %134 = vector.load %arg8[%c0_128, %c0_129] : memref<4x1xf32, #tpu.memory_space<vmem>>, vector<4x1xf32>
    %135 = vector.broadcast %134 : vector<4x1xf32> to vector<4x512xf32>
    %136 = arith.addf %133, %135 : vector<4x512xf32>
    %cst_130 = arith.constant 5.000000e-01 : f32
    %137 = vector.broadcast %cst_130 : f32 to vector<4x512xf32>
    %138 = arith.mulf %137, %136 : vector<4x512xf32>
    %cst_131 = arith.constant 4.471500e-02 : f32
    %139 = vector.broadcast %cst_131 : f32 to vector<4x512xf32>
    %140 = arith.mulf %139, %136 : vector<4x512xf32>
    %141 = arith.mulf %140, %136 : vector<4x512xf32>
    %142 = arith.mulf %141, %136 : vector<4x512xf32>
    %143 = arith.addf %136, %142 : vector<4x512xf32>
    %cst_132 = arith.constant 0.797884583 : f32
    %144 = vector.broadcast %cst_132 : f32 to vector<4x512xf32>
    %145 = arith.mulf %144, %143 : vector<4x512xf32>
    %146 = math.tanh %145 : vector<4x512xf32>
    %cst_133 = arith.constant 1.000000e+00 : f32
    %147 = vector.broadcast %cst_133 : f32 to vector<4x512xf32>
    %148 = arith.addf %147, %146 : vector<4x512xf32>
    %149 = arith.mulf %138, %148 : vector<4x512xf32>
    %c0_134 = arith.constant 0 : index
    %c0_135 = arith.constant 0 : index
    %c0_136 = arith.constant 0 : index
    %150 = vector.load %arg9[%c0_134, %c0_135, %c0_136] : memref<1x4x512xf32, #tpu.memory_space<vmem>>, vector<1x4x512xf32>
    %151 = vector.shape_cast %150 : vector<1x4x512xf32> to vector<4x512xf32>
    %152 = vector.shape_cast %149 : vector<4x512xf32> to vector<1x4x512xf32>
    tpu.vector_store %arg9[%c0_134, %c0_135, %c0_136], %152 {strides = array<i32>} : memref<1x4x512xf32, #tpu.memory_space<vmem>>, vector<1x4x512xf32>,
    return
  }
  func.func @transform_0(%arg0: i32) -> (i32, i32, i32, i32) {
    %c0_i32 = arith.constant 0 : i32
    %c0_i32_0 = arith.constant 0 : i32
    %c0_i32_1 = arith.constant 0 : i32
    %c0_i32_2 = arith.constant 0 : i32
    return %arg0, %c0_i32, %c0_i32_0, %c0_i32_1 : i32, i32, i32, i32
  }
  func.func @transform_1(%arg0: i32) -> (i32, i32, i32, i32) {
    %c0_i32 = arith.constant 0 : i32
    %c0_i32_0 = arith.constant 0 : i32
    %c0_i32_1 = arith.constant 0 : i32
    %c0_i32_2 = arith.constant 0 : i32
    return %arg0, %c0_i32, %c0_i32_0, %c0_i32_1 : i32, i32, i32, i32
  }
  func.func @transform_2(%arg0: i32) -> (i32, i32, i32, i32) {
    %c0_i32 = arith.constant 0 : i32
    %c0_i32_0 = arith.constant 0 : i32
    %c0_i32_1 = arith.constant 0 : i32
    %c0_i32_2 = arith.constant 0 : i32
    return %arg0, %c0_i32, %c0_i32_0, %c0_i32_1 : i32, i32, i32, i32
  }
  func.func @transform_3(%arg0: i32) -> (i32, i32, i32, i32) {
    %c0_i32 = arith.constant 0 : i32
    %c0_i32_0 = arith.constant 0 : i32
    %c0_i32_1 = arith.constant 0 : i32
    %c0_i32_2 = arith.constant 0 : i32
    return %arg0, %c0_i32, %c0_i32_0, %c0_i32_1 : i32, i32, i32, i32
  }
  func.func @transform_4(%arg0: i32) -> (i32, i32, i32) {
    %c0_i32 = arith.constant 0 : i32
    %c0_i32_0 = arith.constant 0 : i32
    %c0_i32_1 = arith.constant 0 : i32
    return %arg0, %c0_i32, %c0_i32_0 : i32, i32, i32
  }
  func.func @transform_5(%arg0: i32) -> (i32, i32) {
    %c0_i32 = arith.constant 0 : i32
    %c0_i32_0 = arith.constant 0 : i32
    %c0_i32_1 = arith.constant 0 : i32
    return %c0_i32, %c0_i32_0 : i32, i32
  }
  func.func @transform_6(%arg0: i32) -> (i32, i32) {
    %c0_i32 = arith.constant 0 : i32
    %c0_i32_0 = arith.constant 0 : i32
    %c0_i32_1 = arith.constant 0 : i32
    return %c0_i32, %c0_i32_0 : i32, i32
  }
  func.func @transform_7(%arg0: i32) -> (i32, i32) {
    %c0_i32 = arith.constant 0 : i32
    %c0_i32_0 = arith.constant 0 : i32
    %c0_i32_1 = arith.constant 0 : i32
    return %c0_i32, %c0_i32_0 : i32, i32
  }
  func.func @transform_8(%arg0: i32) -> (i32, i32, i32) {
    %c0_i32 = arith.constant 0 : i32
    %c0_i32_0 = arith.constant 0 : i32
    %c0_i32_1 = arith.constant 0 : i32
    return %arg0, %c0_i32, %c0_i32_0 : i32, i32, i32
  }
}

</mosaic_0001>

<bundles_post_ra>
// kernel: _lambda_.2
= control target key start
LH: loop header
LB: loop body
LE: loop exit
PB: predicated region body
PF: predicated region fallthrough
CT: control target
= control target key end

     0   :  { %v530_v1 = vmov 0   ;;  %vm157_vm0 = vcmask 130048   ;;  %s717_s0 = inlined_call_operand.vmem [shape: bf16[144,256], index: 0, kind: input, shape index: {}]   ;;  %s718_s1 = inlined_call_operand.vmem [shape: bf16[144,256], index: 1, kind: input, shape index: {}]   ;;  %s719_s2 = inlined_call_operand.vmem [shape: bf16[16,144], index: 2, kind: input, shape index: {}]   ;;  %s720_s3 = inlined_call_operand.vmem [shape: bf16[16,144], index: 3, kind: input, shape index: {}]   ;;  %s721_s5 = inlined_call_operand.vmem [shape: f32[16,1], index: 5, kind: input, shape index: {}]   ;;  %s722_s4 = inlined_call_operand.vmem [shape: f32[16,1], index: 4, kind: input, shape index: {}]   ;;  %s723_s6 = inlined_call_operand.vmem [shape: bf16[16,256], index: 6, kind: output, shape index: {0}]   ;;  %s724_s7 = inlined_call_operand.vmem [shape: bf16[16,256], index: 7, kind: output, shape index: {1}]  }
   0x1   :  { %v470_v0 = vld [vmem:[%s717_s0 + $0x74] ss:$8 sps:$4 sm:$0xff]   ;;  %469 = vset.pattern.permute.xlu1 %v530_v1  ;;  %468 = vset.pattern.permute.xlu0 %v530_v1  ;;  %v474_v3 = vld [vmem:[%s717_s0 + $0x70] ss:$8 sps:$4 sm:$0xff]   ;;  %v476_v5 = vld [vmem:[%s717_s0 + $0x64] ss:$8 sps:$4 sm:$0xff]  }
   0x2   :  { %v472_v2 = vld [vmem:[%s718_s1 + $0x74] ss:$8 sps:$4 sm:$0xff]   ;;  %161 = vmatprep.subr.bf16.mxu0 %v470_v0  ;;  %v475_v4 = vld [vmem:[%s718_s1 + $0x70] ss:$8 sps:$4 sm:$0xff]   ;;  %v478_v6 = vld [vmem:[%s718_s1 + $0x64] ss:$8 sps:$4 sm:$0xff]  }
   0x3   :  { %352 = vmatprep.subr.bf16.mxu1 %v472_v2  ;;  %162 = vmatpush1.bf16.msra.mxu0 %v474_v3  ;;  %v480_v7 = vld [vmem:[%s717_s0 + $0x60] ss:$8 sps:$4 sm:$0xff]   ;;  %v482_v9 = vld [vmem:[%s717_s0 + $0x54] ss:$8 sps:$4 sm:$0xff]   ;;  %v486_v11 = vld [vmem:[%s717_s0 + $0x50] ss:$8 sps:$4 sm:$0xff]  }
   0x4   :  { %353 = vmatpush1.bf16.msra.mxu1 %v475_v4  ;;  %163 = vmatprep.subr.bf16.mxu0 %v476_v5  ;;  %v481_v8 = vld [vmem:[%s718_s1 + $0x60] ss:$8 sps:$4 sm:$0xff]   ;;  %v484_v10 = vld [vmem:[%s718_s1 + $0x54] ss:$8 sps:$4 sm:$0xff]   ;;  %v487_v12 = vld [vmem:[%s718_s1 + $0x50] ss:$8 sps:$4 sm:$0xff]  }
   0x5   :  { %354 = vmatprep.subr.bf16.mxu1 %v478_v6  ;;  %v488_v13 = vld [vmem:[%s717_s0 + $0x44] ss:$8 sps:$4 sm:$0xff]   ;;  %v492_v15 = vld [vmem:[%s717_s0 + $0x40] ss:$8 sps:$4 sm:$0xff]   ;;  %v494_v17 = vld [vmem:[%s717_s0 + $0x34] ss:$8 sps:$4 sm:$0xff]  }
   0x6   :  { %v490_v14 = vld [vmem:[%s718_s1 + $0x44] ss:$8 sps:$4 sm:$0xff]   ;;  %v493_v16 = vld [vmem:[%s718_s1 + $0x40] ss:$8 sps:$4 sm:$0xff]   ;;  %v496_v18 = vld [vmem:[%s718_s1 + $0x34] ss:$8 sps:$4 sm:$0xff]  }
   0x7   :  { %164 = vmatpush1.bf16.msra.mxu0 %v480_v7  ;;  %v498_v19 = vld [vmem:[%s717_s0 + $0x30] ss:$8 sps:$4 sm:$0xff]   ;;  %v500_v21 = vld [vmem:[%s717_s0 + $0x24] ss:$8 sps:$4 sm:$0xff]   ;;  %v504_v23 = vld [vmem:[%s717_s0 + $0x20] ss:$8 sps:$4 sm:$0xff]  }
   0x8   :  { %355 = vmatpush1.bf16.msra.mxu1 %v481_v8  ;;  %165 = vmatprep.subr.bf16.mxu0 %v482_v9  ;;  %v499_v20 = vld [vmem:[%s718_s1 + $0x30] ss:$8 sps:$4 sm:$0xff]   ;;  %v502_v22 = vld [vmem:[%s718_s1 + $0x24] ss:$8 sps:$4 sm:$0xff]   ;;  %v505_v24 = vld [vmem:[%s718_s1 + $0x20] ss:$8 sps:$4 sm:$0xff]  }
   0x9   :  { %356 = vmatprep.subr.bf16.mxu1 %v484_v10  ;;  %v506_v25 = vld [vmem:[%s717_s0 + $0x14] ss:$8 sps:$4 sm:$0xff]   ;;  %v510_v27 = vld [vmem:[%s717_s0 + $0x10] ss:$8 sps:$4 sm:$0xff]   ;;  %v512_v29 = vld [vmem:[%s717_s0 + $0x4] ss:$8 sps:$4 sm:$0xff]  }
   0xa   :  { %v508_v26 = vld [vmem:[%s718_s1 + $0x14] ss:$8 sps:$4 sm:$0xff]   ;;  %v511_v28 = vld [vmem:[%s718_s1 + $0x10] ss:$8 sps:$4 sm:$0xff]   ;;  %v514_v30 = vld [vmem:[%s718_s1 + $0x4] ss:$8 sps:$4 sm:$0xff]  }
   0xb   :  { %166 = vmatpush1.bf16.msra.mxu0 %v486_v11  ;;  %v526_v31 = vld [vmem:[%s719_s2 + $0x4] ss:$8 sps:$4 sm:$0xff]   ;;  %v516_v35 = vld [vmem:[%s717_s0] ss:$8 sps:$4 sm:$0xff]  }
   0xc   :  { %357 = vmatpush1.bf16.msra.mxu1 %v487_v12  ;;  %167 = vmatprep.subr.bf16.mxu0 %v488_v13  ;;  %v529_v32 = vld [vmem:[%s720_s3 + $0x4] ss:$8 sps:$4 sm:$0xff]   ;;  %v517_v36 = vld [vmem:[%s718_s1] ss:$8 sps:$4 sm:$0xff]  }
   0xd   :  { %358 = vmatprep.subr.bf16.mxu1 %v490_v14  ;;  %v238_v33 = vld [vmem:[%s721_s5] sm:$0xff]  ;;  %437 = vmatprep.mubr.msk.bf16.mxu0 %vm157_vm0, %v526_v31  ;;  %v239_v37 = vld [vmem:[%s721_s5 + $0x8] sm:$0xff] }
   0xe   :  { %242 = vperm.xlu1 %469, %v238_v33   ;;  %v46_v34 = vld [vmem:[%s722_s4] sm:$0xff]  ;;  %460 = vmatprep.mubr.msk.bf16.mxu1 %vm157_vm0, %v529_v32  ;;  %v47_v40 = vld [vmem:[%s722_s4 + $0x8] sm:$0xff] }
   0xf   :  { %168 = vmatpush1.bf16.msra.mxu0 %v492_v15  ;;  %v518_v38 = vld [vmem:[%s717_s0 + $0x84] ss:$8 sps:$4 sm:$0xff]   ;;  %50 = vperm.xlu0 %468, %v46_v34   ;;  %v522_v41 = vld [vmem:[%s717_s0 + $0x80] ss:$8 sps:$4 sm:$0xff]  }
  0x10   :  { %359 = vmatpush1.bf16.msra.mxu1 %v493_v16  ;;  %169 = vmatprep.subr.bf16.mxu0 %v494_v17  ;;  %v520_v39 = vld [vmem:[%s718_s1 + $0x84] ss:$8 sps:$4 sm:$0xff]   ;;  %v523_v42 = vld [vmem:[%s718_s1 + $0x80] ss:$8 sps:$4 sm:$0xff]  }
  0x11   :  { %360 = vmatprep.subr.bf16.mxu1 %v496_v18  ;;  %v524_v43 = vld [vmem:[%s719_s2] ss:$8 sps:$4 sm:$0xff]  }
  0x12   :  { %247 = vperm.xlu1 %469, %v239_v37   ;;  %v527_v44 = vld [vmem:[%s720_s3] ss:$8 sps:$4 sm:$0xff]  }
  0x13   :  { %170 = vmatpush1.bf16.msra.mxu0 %v498_v19  ;;  %55 = vperm.xlu0 %468, %v47_v40  }
  0x14   :  { %361 = vmatpush1.bf16.msra.mxu1 %v499_v20  ;;  %171 = vmatprep.subr.bf16.mxu0 %v500_v21 }
  0x15   :  { %362 = vmatprep.subr.bf16.mxu1 %v502_v22 }
  0x17   :  { %172 = vmatpush1.bf16.msra.mxu0 %v504_v23 }
  0x18   :  { %363 = vmatpush1.bf16.msra.mxu1 %v505_v24  ;;  %173 = vmatprep.subr.bf16.mxu0 %v506_v25 }
  0x19   :  { %364 = vmatprep.subr.bf16.mxu1 %v508_v26 }
  0x1b   :  { %174 = vmatpush1.bf16.msra.mxu0 %v510_v27 }
  0x1c   :  { %365 = vmatpush1.bf16.msra.mxu1 %v511_v28  ;;  %175 = vmatprep.subr.bf16.mxu0 %v512_v29 }
  0x1d   :  { %366 = vmatprep.subr.bf16.mxu1 %v514_v30 }
  0x1f   :  { %176 = vmatpush1.bf16.msra.mxu0 %v516_v35 }
  0x20   :  { %367 = vmatpush1.bf16.msra.mxu1 %v517_v36  ;;  %191 = vmatprep.subr.bf16.mxu0 %v518_v38 }
  0x21   :  { %382 = vmatprep.subr.bf16.mxu1 %v520_v39 }
  0x23   :  { %192 = vmatpush2.bf16.msra.mxu0 %v522_v41 }
  0x24   :  { %383 = vmatpush2.bf16.msra.mxu1 %v523_v42 }
  0x26   :  { %194 = vmatmul.mubr.bf16.vlgmr.msra.gmra.mxu0 %v524_v43 }
  0x27   :  { %385 = vmatmul.mubr.bf16.vlgmr.msra.gmra.mxu1 %v527_v44 }
  0x89   :  { %v243_v45 = vpop.permute.xlu1 %242 }
  0x8a   :  { %v51_v46 = vpop.permute.xlu0 %50 }
  0x8d   :  { %v248_v57 = vpop.permute.xlu1 %247 }
  0x8e   :  { %v56_v58 = vpop.permute.xlu0 %55 }
  0xe6   :  { %v195_v47 = vpop.f32.mrf.mxu0 }
  0xe7   :  { %v386_v48 = vpop.f32.mrf.mxu1  ;;  %v196_v51 = vadd.f32 %v195_v47, %v51_v46 }
  0xe8   :  { %v197_v49 = vpop.f32.mrf.mxu0  ;;  %v387_v52 = vadd.f32 %v386_v48, %v243_v45 }
  0xe9   :  { %v388_v50 = vpop.f32.mrf.mxu1  ;;  %v198_v53 = vadd.f32 %v197_v49, %v51_v46 }
  0xea   :  { %v389_v54 = vadd.f32 %v388_v50, %v243_v45  ;;  %v199_v55 = vpop.f32.mrf.mxu0 }
  0xeb   :  { %v390_v56 = vpop.f32.mrf.mxu1  ;;  %v463_v59 = vpack.c.bf16 %v198_v53, %v196_v51  ;;  %v200_v63 = vadd.f32 %v199_v55, %v56_v58 }
  0xec   :  { %v465_v60 = vpack.c.bf16 %v389_v54, %v387_v52  ;;  %v201_v61 = vpop.f32.mrf.mxu0  ;;  %v391_v0 = vadd.f32 %v390_v56, %v248_v57 }
  0xed   :  { %v392_v62 = vpop.f32.mrf.mxu1  ;;  %216 = vst [vmem:[%s723_s6] sm:$0xff] %v463_v59  ;;  %v202_v1 = vadd.f32 %v201_v61, %v56_v58 }
  0xee   :  { %407 = vst [vmem:[%s724_s7] sm:$0xff] %v465_v60  ;;  %v393_v2 = vadd.f32 %v392_v62, %v248_v57 }
  0xef   :  { %v464_v3 = vpack.c.bf16 %v202_v1, %v200_v63 }
  0xf0   :  { %v466_v4 = vpack.c.bf16 %v393_v2, %v391_v0 }
  0xf1   :  { %217 = vst [vmem:[%s723_s6 + $0x8] sm:$0xff] %v464_v3 }
  0xf2   :  { %408 = vst [vmem:[%s724_s7 + $0x8] sm:$0xff] %v466_v4 }

// kernel: _lambda_.3
= control target key start
LH: loop header
LB: loop body
LE: loop exit
PB: predicated region body
PF: predicated region fallthrough
CT: control target
= control target key end

     0   :  { %13 = vsyncpa [#allocation3], 0  ;;  %s1491_s0 = inlined_call_operand.vmem [shape: bf16[2,8,4,512], index: 0, kind: input, shape index: {}]   ;;  %s1492_s1 = inlined_call_operand.vmem [shape: bf16[2,8,4,512], index: 1, kind: input, shape index: {}]   ;;  %s1493_s2 = inlined_call_operand.vmem [shape: bf16[2,8,4,512], index: 2, kind: input, shape index: {}]   ;;  %s1494_s3 = inlined_call_operand.vmem [shape: bf16[2,8,4,512], index: 3, kind: input, shape index: {}]   ;;  %s1495_s4 = inlined_call_operand.vmem [shape: f32[2,4,512], index: 4, kind: input, shape index: {}]   ;;  %s1496_s5 = inlined_call_operand.vmem [shape: f32[4,4], index: 5, kind: input, shape index: {}]   ;;  %s1497_s6 = inlined_call_operand.vmem [shape: f32[4,4], index: 6, kind: input, shape index: {}]   ;;  %s1498_s7 = inlined_call_operand.vmem [shape: f32[4,1], index: 7, kind: input, shape index: {}]   ;;  %s1499_s8 = inlined_call_operand.hbm [shape: f32[2,4,512], index: 8, kind: output, shape index: {}]  }
   0x1   :  { %15 = vsyncpa [#allocation3 + $0x1], 0  ;;  %s1343_s27 = smov 0   ;;  %s1345_s28 = smov 0  }
   0x2   :  { %s1347_s29 = smov 0   ;;  %s1349_s30 = smov 0  }
   0x3 LB: > { %s1364_s9 = sadd.s32 4294967295, %s1292_s30   ;;  %s1068_s10 = sadd.s32 4294967294, %s1292_s30   ;;  %s1292_s30 = sphi %s1349_s30, %s1505_s30   ;;  %s1288_s29 = sphi %s1347_s29, %s1504_s29   ;;  %s1284_s28 = sphi %s1345_s28, %s1503_s28   ;;  %s1280_s27 = sphi %s1343_s27, %s1502_s27  }
   0x4   : > { %s1368_s11 = sadd.s32 1, %s1292_s30   ;;  %s221_s12 = sadd.s32 1, %s1288_s29 }
   0x5   : > { %s218_s13 = ssub.s32 %s1292_s30, %s1368_s11  ;;  %p231_p0 = scmp.ne.s32.totalorder %s1288_s29, %s1284_s28 }
   0x6   : > { %p219_p1 = scmp.eq.s32.totalorder %s218_s13, 0  ;;  %p232_p2 = scmp.eq.s32.totalorder %s1364_s9, 1 }
   0x7   : > { %p237_p3 = scmp.ne.s32.totalorder %s1284_s28, %s1280_s27  ;;  %p238_p4 = scmp.eq.s32.totalorder %s1068_s10, 1 }
   0x8   : > { %s1379_s14 = scalar_select %p219_p1, %s1288_s29, %s221_s12  }
   0x9   : > { %p1381_p5 = por %p232_p2, %p231_p0  ;;  %p1385_p6 = por %p238_p4, %p237_p3 }
   0xa   : > { %p1071_p7 = scmp.ge.s32.totalorder %s1292_s30, 1  ;;  %p305_p8 = scmp.lt.s32.totalorder %s1292_s30, 3 }
   0xc   : > { %p306_p9 = pnand %p1071_p7, %p305_p8 }
   0xd   : > { %p359_p10 = scmp.lt.s32.totalorder (!%p306_p9), %s1364_s9, 1  ;;  %s356_s12 = sand.u32 (!%p306_p9), 1, %s1284_s28  }
   0xe   : > { %309 = sbr.rel (%p306_p9) target bundleno = 296 (0x128), region = 52  ;;  %s1133_s18 = sshll.u32 (!%p306_p9), %s1364_s9, 8 }
   0xf   : > { %s947_s24 = scalar_lea.sflag (!%p306_p9), [#allocation3], %s356_s12 }
  0x13   : > { %v1294_v0 = vmov 0.0   ;;  %v890_v1 = vld [vmem:[%s1498_s7] sm:$0xf]  ;;  %s1398_s19 = scalar_select %p359_p10, %s1364_s9, 1  ;;  %v1295_v2 = vmov 0   ;;  %vm582_vm0 = vcmask 1043456   ;;  %v1244_v39 = vlaneseq }
  0x14   : > { %655 = vmatprep.mubr.f32.mxu0 %v1294_v0  ;;  %726 = vmatprep.mubr.f32.mxu1 %v1294_v0  ;;  %vm578_vm1 = vcmask 31744   ;;  %v1296_v36 = vmov 1935823168   ;;  %v573_v48 = vld [vmem:[%s1497_s6] sm:$0xf] }
  0x15   : > { %1175 = vset.pattern.permute.xlu0 %v1295_v2  ;;  %s1128_s20 = sshll.u32 %s1398_s19, 6  ;;  %v1242_v37 = vunpack.c.l.s4 %v1296_v36  ;;  %v1245_v40 = vshrl.u32 %v1244_v39, 7  ;;  %v572_v59 = vld [vmem:[%s1496_s5] sm:$0xf] }
  0x16   : > { %893 = vperm.xlu0 %1175, %v890_v1   ;;  %s368_s23 = scalar_lea.vmem %s1492_s1, %s1128_s20  ;;  %s378_s26 = scalar_lea.vmem %s1494_s3, %s1128_s20 }
  0x17   : > { %v480_v3 = vld [vmem:[%s368_s23] sm:$0xff]  ;;  %v1097_v5 = vld [vmem:[%s368_s23 + $0x8] sm:$0xff]  ;;  %v1099_v7 = vld [vmem:[%s368_s23 + $0x10] sm:$0xff]  ;;  %s1410_s13 = scalar_lea.vmem %s1491_s0, %s1128_s20  ;;  %s1415_s21 = scalar_lea.vmem %s1493_s2, %s1128_s20  ;;  %v1243_v38 = vunpack.c.0.s8 %v1242_v37 }
  0x18   : > { %v483_v4 = vld [vmem:[%s378_s26] sm:$0xff]  ;;  %v1098_v6 = vld [vmem:[%s378_s26 + $0x8] sm:$0xff]  ;;  %v1100_v8 = vld [vmem:[%s378_s26 + $0x10] sm:$0xff] }
  0x19   : > { %v1101_v9 = vld [vmem:[%s368_s23 + $0x18] sm:$0xff]  ;;  %v1103_v11 = vld [vmem:[%s368_s23 + $0x20] sm:$0xff]  ;;  %v1105_v13 = vld [vmem:[%s368_s23 + $0x28] sm:$0xff]  ;;  %1230 = vmul.bf16.f32.vacc0 %v483_v4, %v480_v3  ;;  %v1246_v41 = vsub.s32 %v1243_v38, %v1245_v40 }
  0x1a   : > { %v1102_v10 = vld [vmem:[%s378_s26 + $0x18] sm:$0xff]  ;;  %v1104_v12 = vld [vmem:[%s378_s26 + $0x20] sm:$0xff]  ;;  %v1106_v14 = vld [vmem:[%s378_s26 + $0x28] sm:$0xff]  ;;  %1231 = vmac.bf16.f32.vacc0 %v1098_v6, %v1097_v5 }
  0x1b   : > { %v1107_v15 = vld [vmem:[%s368_s23 + $0x30] sm:$0xff]  ;;  %v1109_v17 = vld [vmem:[%s368_s23 + $0x38] sm:$0xff]  ;;  %1232 = vmac.bf16.f32.vacc0 %v1100_v8, %v1099_v7  ;;  %v384_v19 = vld [vmem:[%s1410_s13] sm:$0xff]  ;;  %s1132_s23 = sshll.u32 %s1398_s19, 4 }
  0x1c   : > { %v1108_v16 = vld [vmem:[%s378_s26 + $0x30] sm:$0xff]  ;;  %v1110_v18 = vld [vmem:[%s378_s26 + $0x38] sm:$0xff]  ;;  %1233 = vmac.bf16.f32.vacc0 %v1102_v10, %v1101_v9  ;;  %v387_v20 = vld [vmem:[%s1415_s21] sm:$0xff]  ;;  %s383_s26 = scalar_lea.vmem %s1495_s4, %s1132_s23  ;;  %s959_s23 = scalar_lea.hbm %s1499_s8, %s1133_s18 }
  0x1d   : > { %1234 = vmac.bf16.f32.vacc0 %v1104_v12, %v1103_v11  ;;  %v1083_v21 = vld [vmem:[%s1410_s13 + $0x8] sm:$0xff]  ;;  %v1085_v23 = vld [vmem:[%s1410_s13 + $0x10] sm:$0xff]  ;;  %v1087_v25 = vld [vmem:[%s1410_s13 + $0x18] sm:$0xff]  ;;  %1254 = vmul.bf16.f32.vacc1 %v387_v20, %v384_v19 }
  0x1e   : > { %v1084_v22 = vld [vmem:[%s1415_s21 + $0x8] sm:$0xff]  ;;  %v1086_v24 = vld [vmem:[%s1415_s21 + $0x10] sm:$0xff]  ;;  %1235 = vmac.bf16.f32.vacc0 %v1106_v14, %v1105_v13  ;;  %v1088_v26 = vld [vmem:[%s1415_s21 + $0x18] sm:$0xff] }
  0x1f   : > { %v1089_v27 = vld [vmem:[%s1410_s13 + $0x20] sm:$0xff]  ;;  %1236 = vmac.bf16.f32.vacc0 %v1108_v16, %v1107_v15  ;;  %v1091_v29 = vld [vmem:[%s1410_s13 + $0x28] sm:$0xff]  ;;  %v1093_v31 = vld [vmem:[%s1410_s13 + $0x30] sm:$0xff]  ;;  %1255 = vmac.bf16.f32.vacc1 %v1084_v22, %v1083_v21 }
  0x20   : > { %v1090_v28 = vld [vmem:[%s1415_s21 + $0x20] sm:$0xff]  ;;  %v1092_v30 = vld [vmem:[%s1415_s21 + $0x28] sm:$0xff]  ;;  %1237 = vmac.bf16.f32.vacc0 %v1110_v18, %v1109_v17  ;;  %v1094_v44 = vld [vmem:[%s1415_s21 + $0x30] sm:$0xff]  ;;  %1256 = vmac.bf16.f32.vacc1 %v1086_v24, %v1085_v23 }
  0x21   : > { %v1095_v45 = vld [vmem:[%s1410_s13 + $0x38] sm:$0xff]  ;;  %1257 = vmac.bf16.f32.vacc1 %v1088_v26, %v1087_v25  ;;  %v476_v50 = vld [vmem:[%s383_s26] sm:$0xff]  ;;  %v477_v60 = vld [vmem:[%s383_s26 + $0x8] sm:$0xff]  ;;  %s1072_s13 = sshll.u32 %s356_s12, 4  ;;  %s1297_s26 = smov [#allocation2]  }
  0x22   : > { %v1238_v32 = vmovacc.add.low.vacc0  ;;  %v1096_v46 = vld [vmem:[%s1415_s21 + $0x38] sm:$0xff]  ;;  %1258 = vmac.bf16.f32.vacc1 %v1090_v28, %v1089_v27  ;;  %s358_s17 = scalar_lea.vmem [#allocation2], %s1072_s13  ;;  %s1188_s19 = sshll.u32 %s1297_s26, 4  ;;  %s1189_s19 = int_to_ptr.vmem [resolvable:$false] %s1188_s19 }
  0x23   : > { %v1239_v33 = vmovacc.add.high.vacc0  ;;  %1259 = vmac.bf16.f32.vacc1 %v1092_v30, %v1091_v29  ;;  %s961_s21 = sshll.u32 %s358_s17, 4  ;;  %s1190_s9 = scalar_lea.vmem %s1189_s19, 512  ;;  %s962_s21 = int_to_ptr.vmem [resolvable:$true] %s961_s21 }
  0x24   : > { %1260 = vmac.bf16.f32.vacc1 %v1094_v44, %v1093_v31  ;;  %s1184_s25 = scalar_lea.vmem %s962_s21, 256  ;;  %p1191_p0 = scmp.lt.s32.totalorder %s962_s21, %s1189_s19 }
  0x25   : > { %v1240_v34 = vcombine.low %v1238_v32, %v1239_v33  ;;  %v1241_v35 = vcombine.high %v1238_v32, %v1239_v33  ;;  %1261 = vmac.bf16.f32.vacc1 %v1096_v46, %v1095_v45  ;;  %p1185_p11 = scmp.ne.s32.totalorder %s962_s21, %s1184_s25  ;;  %p1192_p1 = scmp.lt.s32.totalorder %s1190_s9, %s1184_s25 }
  0x27   : > { %v1247_v42 = vrot.slane %v1240_v34, %v1246_v41  ;;  %v1253_v43 = vrot.slane %v1241_v35, %v1246_v41  ;;  %v1262_v51 = vmovacc.add.low.vacc1  ;;  %p1186_p12 = pnand %p1185_p11, %p1381_p5  ;;  %p1193_p2 = por %p1192_p1, %p1191_p0 }
  0x28   : > { %v1263_v52 = vmovacc.add.high.vacc1 }
  0x29   : > { %v576_v47 = vcombine.high %v1247_v42, %v1247_v42  ;;  %v577_v49 = vcombine.high %v1253_v43, %v1253_v43  ;;  %p1187_p13 = pneg %p1186_p12 }
  0x2a   : > { %v1264_v53 = vcombine.low %v1262_v51, %v1263_v52  ;;  %v1265_v54 = vcombine.high %v1262_v51, %v1263_v52 }
  0x2b   : > { %1111 = vmatprep.subr.msk.mxu0 %vm582_vm0, %v576_v47  ;;  %1114 = vmatprep.subr.msk.mxu1 %vm582_vm0, %v577_v49  ;;  %p1194_p3 = pnand %p1193_p2, %p1187_p13 }
  0x2c   : > { %1112 = vmatpush1.msk.msra.mxu0 %vm582_vm0, %v1247_v42  ;;  %1115 = vmatpush1.msk.msra.mxu1 %vm582_vm0, %v1253_v43  ;;  %v1271_v55 = vrot.slane %v1264_v53, %v1246_v41  ;;  %v1277_v56 = vrot.slane %v1265_v54, %v1246_v41 }
  0x2d   : > { %1113 = vmatmul.mubr.msk.f32.vlgmr.msra.gmra.mxu0 %vm578_vm1, %v573_v48  ;;  %1116 = vmatmul.mubr.msk.f32.vlgmr.msra.gmra.mxu1 %vm578_vm1, %v573_v48 }
  0x2e   : > { %812 = vmatprep.mubr.f32.mxu0 %v1294_v0  ;;  %883 = vmatprep.mubr.f32.mxu1 %v1294_v0  ;;  %v478_v57 = vmul.f32 %v1271_v55, %v476_v50  ;;  %v479_v61 = vmul.f32 %v1277_v56, %v477_v60 }
  0x30   : > { %v735_v58 = vcombine.high %v478_v57, %v478_v57  ;;  %v736_v62 = vcombine.high %v479_v61, %v479_v61 }
  0x32   : > { %1117 = vmatprep.subr.msk.mxu0 %vm582_vm0, %v735_v58  ;;  %1120 = vmatprep.subr.msk.mxu1 %vm582_vm0, %v736_v62 }
  0x33   : > { %1118 = vmatpush1.msk.msra.mxu0 %vm582_vm0, %v478_v57  ;;  %1121 = vmatpush1.msk.msra.mxu1 %vm582_vm0, %v479_v61 }
  0x34   : > { %1119 = vmatmul.mubr.msk.f32.vlgmr.msra.gmra.mxu0 %vm578_vm1, %v572_v59  ;;  %1122 = vmatmul.mubr.msk.f32.vlgmr.msra.gmra.mxu1 %vm578_vm1, %v572_v59 }
  0x91   : > { %v894_v1 = vpop.permute.xlu0 %893 }
  0xed   : > { %v657_v63 = vpop.f32.mrf.mxu0  ;;  %v728_v2 = vpop.f32.mrf.mxu1 }
  0xef   : > { %v659_v0 = vpop.f32.mrf.mxu0  ;;  %v730_v8 = vpop.f32.mrf.mxu1 }
  0xf4   : > { %v814_v3 = vpop.f32.mrf.mxu0  ;;  %v885_v13 = vpop.f32.mrf.mxu1 }
  0xf5   : > { %v815_v4 = vadd.f32 %v814_v3, %v657_v63  ;;  %v886_v14 = vadd.f32 %v885_v13, %v728_v2 }
  0xf6   : > { %v816_v5 = vpop.f32.mrf.mxu0  ;;  %v887_v17 = vpop.f32.mrf.mxu1 }
  0xf7   : > { %v896_v6 = vadd.f32 %v894_v1, %v815_v4  ;;  %v817_v7 = vadd.f32 %v816_v5, %v659_v0  ;;  %v898_v18 = vadd.f32 %v894_v1, %v886_v14  ;;  %v888_v21 = vadd.f32 %v887_v17, %v730_v8 }
  0xf9   : > { %v904_v9 = vmul.f32 0.044715, %v896_v6  ;;  %v897_v10 = vadd.f32 %v894_v1, %v817_v7  ;;  %v906_v22 = vmul.f32 0.044715, %v898_v18  ;;  %v899_v24 = vadd.f32 %v894_v1, %v888_v21 }
  0xfa   : > { %v900_v39 = vmul.f32 0.5, %v896_v6  ;;  %v902_v48 = vmul.f32 0.5, %v898_v18 }
  0xfb   : > { %v908_v11 = vmul.f32 %v904_v9, %v896_v6  ;;  %v905_v12 = vmul.f32 0.044715, %v897_v10  ;;  %v910_v26 = vmul.f32 %v906_v22, %v898_v18  ;;  %v907_v28 = vmul.f32 0.044715, %v899_v24 }
  0xfc   : > { %v901_v40 = vmul.f32 0.5, %v897_v10  ;;  %v903_v49 = vmul.f32 0.5, %v899_v24 }
  0xfd   : > { %v912_v15 = vmul.f32 %v908_v11, %v896_v6  ;;  %v909_v16 = vmul.f32 %v905_v12, %v897_v10  ;;  %v914_v29 = vmul.f32 %v910_v26, %v898_v18  ;;  %v911_v30 = vmul.f32 %v907_v28, %v899_v24 }
  0xff   : > { %v916_v19 = vadd.f32 %v912_v15, %v896_v6  ;;  %v913_v20 = vmul.f32 %v909_v16, %v897_v10  ;;  %v918_v31 = vadd.f32 %v914_v29, %v898_v18  ;;  %v915_v32 = vmul.f32 %v911_v30, %v899_v24 }
 0x101   : > { %v917_v23 = vadd.f32 %v913_v20, %v897_v10  ;;  %v920_v25 = vmul.f32 0.7978846, %v916_v19  ;;  %v919_v33 = vadd.f32 %v915_v32, %v899_v24  ;;  %v922_v34 = vmul.f32 0.7978846, %v918_v31 }
 0x103   : > { %v921_v27 = vmul.f32 0.7978846, %v917_v23  ;;  %1176 = vtanh.f32 %v920_v25  ;;  %v923_v35 = vmul.f32 0.7978846, %v919_v33 }
 0x105   : > { %1178 = vtanh.f32 %v921_v27 }
 0x106   : > { %1180 = vtanh.f32 %v922_v34 }
 0x107   : > { %1182 = vtanh.f32 %v923_v35 }
 0x110   : > { %v1177_v36 = vpop.eup %1176 }
 0x111   : > { %v928_v38 = vadd.f32 1.0, %v1177_v36 }
 0x112   : > { %v1179_v37 = vpop.eup %1178 }
 0x113   : > { %v929_v41 = vadd.f32 1.0, %v1179_v37  ;;  %v932_v42 = vmul.f32 %v928_v38, %v900_v39  ;;  %v1181_v45 = vpop.eup %1180 }
 0x114   : > { %v930_v46 = vadd.f32 1.0, %v1181_v45  ;;  %v1183_v47 = vpop.eup %1182 }
 0x115   : > { %v933_v43 = vmul.f32 %v929_v41, %v901_v40  ;;  %v931_v50 = vadd.f32 1.0, %v1183_v47 }
 0x116   : > { %v934_v51 = vmul.f32 %v930_v46, %v902_v48 }
 0x117   : > { %v940_v44 = vcombine.low %v932_v42, %v933_v43  ;;  %v935_v52 = vmul.f32 %v931_v50, %v903_v49 }
 0x119   : > { %944 = vst [vmem:[%s358_s17] sm:$0xff] %v940_v44  ;;  %v941_v53 = vcombine.low %v934_v51, %v935_v52 }
 0x11b   : > { %945 = vst [vmem:[%s358_s17 + $0x8] sm:$0xff] %v941_v53 }
 0x11c   : > { %1197 = shalt.err (!%p1194_p3)
}
 0x11d   : > { %s1198_s10 = scalar_lea.hbm %s959_s23, 256  ;;  %s1202_s17 = scalar_lea.hbm %s1499_s8, 512 }
 0x11e   : > { %p1199_p4 = scmp.ne.s32.totalorder %s959_s23, %s1198_s10  ;;  %p1203_p9 = scmp.lt.s32.totalorder %s959_s23, %s1499_s8 }
 0x11f   : > { %p1204_p10 = scmp.lt.s32.totalorder %s1202_s17, %s1198_s10 }
 0x120   : > { %p1200_p7 = pnand %p1199_p4, %p1381_p5 }
 0x121   : > { %p1205_p11 = por %p1204_p10, %p1203_p9 }
 0x122   : > { %p1201_p8 = pneg %p1200_p7 }
 0x124   : > { %p1206_p12 = pnand %p1205_p11, %p1201_p8 }
 0x126   : > { %1209 = shalt.err (!%p1206_p12)
}
 0x127   : > { %1134 = dma.vmem_to_hbm [thread:$0]  (%p1381_p5), %s962_s21, 256, %s959_s23, %s947_s24  }
 0x128 PF: > { %p1140_p13 = scmp.ge.s32.totalorder %s1292_s30, 2  ;;  %s973_s22 = sand.u32 1, %s1280_s27  }
 0x129   : > { %s974_s25 = scalar_lea.sflag [#allocation3], %s973_s22 }
 0x12a   : > { %p1137_p0 = pnand %p1140_p13, %p1385_p6 }
 0x12c   : > { %p1138_p1 = pneg %p1137_p0 }
 0x12e   : > { %1227 = dma.done.wait (%p1138_p1), %s974_s25, 256  }
 0x12f   : > { %1229 = vsyncadd (%p1138_p1), %s974_s25, 4294967040  ;;  %p18_p2 = scmp.ge.s32.totalorder %s1368_s11, 4   ;;  %s1502_s27 = smov %s1284_s28 }
 0x130   : > { %s1503_s28 = smov %s1288_s29  ;;  %s1504_s29 = smov %s1379_s14 }
 0x131   : > { %s1505_s30 = smov %s1368_s11  ;;  %20 = sbr.rel (!%p18_p2) target bundleno = 3 (0x3), region = 127 }
 0x136   :  { %979 = vsyncpa [#allocation3], 1 }
 0x137   :  { %981 = vsyncpa [#allocation3 + $0x1], 1 }

</bundles_post_ra>
